<compile_context>
chip_gen: v7x
topology: tpu7x:2x2x1
jax: 0.10.0
libtpu: 0.0.40
codegen_flags: <defaults>
</compile_context>

<pallas_src>
import functools

import jax
import jax.numpy as jnp
from jax import lax
from jax.experimental import pallas as pl
from jax.experimental.pallas import tpu as pltpu


def _round_up(x, m):
    return ((x + m - 1) // m) * m


def critic_kernel(x_ref, w1t_ref, b1_ref, w2t_ref, b2_ref, w3_ref, b3_ref, o_ref,
                  *, dot_dtype):
    """One batch tile of the fused Critic MLP, hidden dim on sublanes.

    x_ref   : (TILE_B, obs_dim)   streamed per grid step
    w1t_ref : (Hp, obs_dim)       resident (PyTorch [out, in] layout)
    b1_ref  : (Hp, 1)
    w2t_ref : (Hp, Hp)            resident ([out, in] layout)
    b2_ref  : (Hp, 1)
    w3_ref  : (1, Hp)             value head as a lane row
    b3_ref  : (1, 1)  SMEM scalar
    o_ref   : (1, 1, TILE_B)      lane-dense output row for this batch tile
    """
    x = x_ref[...].astype(dot_dtype)              # (TILE_B, obs)
    w1t = w1t_ref[...].astype(dot_dtype)          # (Hp, obs)

    # Layer 1: z1 = W1 @ x^T  -> (Hp, TILE_B); contraction over obs dims of both.
    z1 = lax.dot_general(
        w1t, x,
        dimension_numbers=(((1,), (1,)), ((), ())),
        preferred_element_type=jnp.float32,
    )
    h1 = jnp.tanh(z1 + b1_ref[...])               # f32 bias + tanh (VPU/EUP)

    # Layer 2: z2 = W2 @ h1 -> (Hp, TILE_B)
    z2 = jnp.dot(w2t_ref[...].astype(dot_dtype), h1.astype(dot_dtype),
                 preferred_element_type=jnp.float32)
    h2 = jnp.tanh(z2 + b2_ref[...])

    # Value head: (1, Hp) @ (Hp, TILE_B) -> (1, TILE_B), lane-dense store.
    v = jnp.dot(w3_ref[...].astype(dot_dtype), h2.astype(dot_dtype),
                preferred_element_type=jnp.float32)
    o_ref[...] = (v + b3_ref[0, 0])[None]


def critic_forward(x, p, *, tile_b=4096, dot_dtype=jnp.float32):
    """Run the fused Critic MLP.

    x: [B, obs_dim] float32
    p: prepared params (see prepare_critic_params)
    dot_dtype: jnp.float32 (exact) or jnp.bfloat16 (faster MXU on v5e/v6e, ~1e-2 drift)
    returns: [B, 1] float32
    """
    B, obs_dim = x.shape
    Hp = p["w1t"].shape[0]
    assert p["w1t"].shape[1] == obs_dim, "prepared params don't match obs_dim"

    # Tile selection:
    #  - large tiles amortize the ~0.35us/step fixed cost and per-step MXU weight pushes
    #  - don't over-pad tiny batches (round to 128 for lane-dense output stores)
    #  - keep >= 2 grid steps when B > 128 so both v7x TensorCores get work.
    tile_b = min(tile_b, _round_up(B, 128), _round_up(pl.cdiv(B, 2), 128))
    num_tiles = pl.cdiv(B, tile_b)
    Bp = num_tiles * tile_b
    xp = x if Bp == B else jnp.pad(x, ((0, Bp - B), (0, 0)))

    # VMEM budget (f32 bytes): x double-buffer + h1/h2 temporaries + weights + out.
    # ~7 MiB at tile_b=4096 -> fits every generation's 32 MiB scoped default; only
    # raise the limit for unusually large caller-requested tiles.
    vmem_bytes = 4 * (2 * tile_b * max(obs_dim, 128)        # x, double buffered, lane-padded
                      + 2 * Hp * tile_b                     # h1 / h2
                      + Hp * (obs_dim + Hp + 3)             # weights + biases
                      + 2 * tile_b)                         # output row, double buffered
    vmem_limit = None
    if vmem_bytes > 28 * 1024 * 1024:
        vmem_limit = min(int(vmem_bytes * 3 // 2), 60 * 1024 * 1024)

    # Advisory cost hint so XLA can schedule surrounding ops around this short call.
    cost = pl.CostEstimate(
        flops=2 * Bp * (obs_dim * Hp + Hp * Hp + Hp),
        transcendentals=2 * Bp * Hp,
        bytes_accessed=4 * (Bp * obs_dim + Hp * (obs_dim + Hp + 3) + Bp),
    )

    const = lambda i: (0, 0)
    kernel = functools.partial(critic_kernel, dot_dtype=dot_dtype)

    out = pl.pallas_call(
        kernel,
        out_shape=jax.ShapeDtypeStruct((num_tiles, 1, tile_b), jnp.float32),
        grid=(num_tiles,),
        in_specs=[
            pl.BlockSpec((tile_b, obs_dim), lambda i: (i, 0)),   # x: streamed/pipelined
            pl.BlockSpec((Hp, obs_dim), const),                  # w1^T: resident
            pl.BlockSpec((Hp, 1), const),                        # b1
            pl.BlockSpec((Hp, Hp), const),                       # w2^T
            pl.BlockSpec((Hp, 1), const),                        # b2
            pl.BlockSpec((1, Hp), const),                        # w3 lane row
            pl.BlockSpec(memory_space=pltpu.MemorySpace.SMEM),   # b3 scalar in SMEM
        ],
        out_specs=pl.BlockSpec((1, 1, tile_b), lambda i: (i, 0, 0)),  # lane-dense row
        compiler_params=pltpu.CompilerParams(
            dimension_semantics=("parallel",),                   # 2 TCs on v7x
            vmem_limit_bytes=vmem_limit,
        ),
        cost_estimate=cost,
    )(xp, p["w1t"], p["b1"], p["w2t"], p["b2"], p["w3_row"], p["b3"])

    return out.reshape(Bp)[:B].reshape(B, 1)


def init_critic_params(key, observation_dim, hidden_size=64):
    """PyTorch-style init: U(-1/sqrt(fan_in), 1/sqrt(fan_in)).

    Weights stored as [in_features, out_features] (transposed vs PyTorch's [out, in]),
    so y = x @ W + b matches y = x @ W_pt.T + b_pt.
    """
    def linear(k, fan_in, fan_out):
        kw, kb = jax.random.split(k)
        bound = 1.0 / jnp.sqrt(jnp.float32(fan_in))
        w = jax.random.uniform(kw, (fan_in, fan_out), jnp.float32, -bound, bound)
        b = jax.random.uniform(kb, (1, fan_out), jnp.float32, -bound, bound)
        return w, b

    k1, k2, k3 = jax.random.split(key, 3)
    w1, b1 = linear(k1, observation_dim, hidden_size)
    w2, b2 = linear(k2, hidden_size, hidden_size)
    w3, b3 = linear(k3, hidden_size, 1)
    return {"w1": w1, "b1": b1, "w2": w2, "b2": b2, "w3": w3, "b3": b3}


def prepare_critic_params(params):
    """Lay the weights out for the sublane-oriented kernel.

    Hidden dim is padded only to a multiple of 8 (sublanes), not 128.  Layers 1-2 are
    stored transposed ([out, in], i.e. PyTorch layout) so the kernel computes
    h = tanh(W @ h_prev + b) with h shaped (Hp, TILE_B).  Padding is exact:
    tanh(0) = 0 and the padded head lanes are 0.
    """
    obs, H = params["w1"].shape
    Hp = _round_up(H, 8)
    f32 = jnp.float32
    w1t = jnp.zeros((Hp, obs), f32).at[:H, :].set(params["w1"].T)
    b1 = jnp.zeros((Hp, 1), f32).at[:H, 0].set(params["b1"].reshape(-1))
    w2t = jnp.zeros((Hp, Hp), f32).at[:H, :H].set(params["w2"].T)
    b2 = jnp.zeros((Hp, 1), f32).at[:H, 0].set(params["b2"].reshape(-1))
    w3_row = jnp.zeros((1, Hp), f32).at[0, :H].set(params["w3"][:, 0])
    b3 = params["b3"].astype(f32).reshape(1, 1)
    return {"w1t": w1t, "b1": b1, "w2t": w2t, "b2": b2, "w3_row": w3_row, "b3": b3}


def critic_reference(x, p):
    """Pure-JAX reference (unpadded params) for correctness check."""
    h = jnp.tanh(x @ p["w1"] + p["b1"])
    h = jnp.tanh(h @ p["w2"] + p["b2"])
    return h @ p["w3"] + p["b3"]


# NOTE: the dots use TPU default matmul precision; pass f32 inputs (default dot_dtype)
# for parity with the f32 PyTorch reference at 1e-5 tolerance.  For bit-level policy
# parity one could additionally request lax.Precision.HIGHEST at an MXU-pass cost.
# TODO(synk): only the default net_arch=None Sequential path is implemented; the
# net_arch list variant and the (training-only) Adam optimizer are out of scope.

if __name__ == "__main__":
    key = jax.random.PRNGKey(0)
    k_param, k_x = jax.random.split(key)

    batch = 8
    observation_dim = 16
    hidden_size = 32

    params = init_critic_params(k_param, observation_dim, hidden_size)
    prepped = prepare_critic_params(params)
    x = jax.random.normal(k_x, (batch, observation_dim), dtype=jnp.float32)

    # Exact f32 path.
    out = jax.block_until_ready(critic_forward(x, prepped))
    ref = critic_reference(x, params)
    assert out.shape == (batch, 1), out.shape
    assert jnp.allclose(out, ref, atol=1e-5, rtol=1e-5), "f32 mismatch vs reference"

    # bf16-MXU-operand path (perf option for v5e/v6e): looser tolerance, smoke test only.
    out_bf16 = jax.block_until_ready(
        critic_forward(x, prepped, dot_dtype=jnp.bfloat16))
    assert out_bf16.shape == (batch, 1), out_bf16.shape
    assert jnp.allclose(out_bf16, ref, atol=5e-2, rtol=5e-2), "bf16 drift too large"

    print("KERNEL_OK")
</pallas_src>

<mosaic_0001>
module attributes {stable_mosaic.version = 11 : i64} {
  func.func @critic_kernel(%arg0: i32, %arg1: memref<128x16xf32, #tpu.memory_space<vmem>>, %arg2: memref<32x16xf32, #tpu.memory_space<vmem>>, %arg3: memref<32x1xf32, #tpu.memory_space<vmem>>, %arg4: memref<32x32xf32, #tpu.memory_space<vmem>>, %arg5: memref<32x1xf32, #tpu.memory_space<vmem>>, %arg6: memref<1x32xf32, #tpu.memory_space<vmem>>, %arg7: memref<1x1xf32, #tpu.memory_space<smem>>, %arg8: memref<1x1x128xf32, #tpu.memory_space<vmem>>) attributes {dimension_semantics = [#tpu.dimension_semantics<parallel>], iteration_bounds = array<i64: 1>, scalar_prefetch = 0 : i64, scratch_operands = 0 : i64, tpu.core_type = #tpu.core_type<tc>, window_params = [{transform_indices = @transform_0, window_bounds = array<i64: 128, 16>}, {pipeline_mode = #tpu.pipeline_mode<synchronous>, transform_indices = @transform_1, window_bounds = array<i64: 32, 16>}, {pipeline_mode = #tpu.pipeline_mode<synchronous>, transform_indices = @transform_2, window_bounds = array<i64: 32, 1>}, {pipeline_mode = #tpu.pipeline_mode<synchronous>, transform_indices = @transform_3, window_bounds = array<i64: 32, 32>}, {pipeline_mode = #tpu.pipeline_mode<synchronous>, transform_indices = @transform_4, window_bounds = array<i64: 32, 1>}, {pipeline_mode = #tpu.pipeline_mode<synchronous>, transform_indices = @transform_5, window_bounds = array<i64: 1, 32>}, {transform_indices = @transform_6, window_bounds = array<i64: 1, 1>}, {transform_indices = @transform_7, window_bounds = array<i64: 1, 1, 128>}]} {
    %c0 = arith.constant 0 : index
    %c0_0 = arith.constant 0 : index
    %0 = vector.load %arg1[%c0, %c0_0] : memref<128x16xf32, #tpu.memory_space<vmem>>, vector<128x16xf32>
    %c0_1 = arith.constant 0 : index
    %c0_2 = arith.constant 0 : index
    %1 = vector.load %arg2[%c0_1, %c0_2] : memref<32x16xf32, #tpu.memory_space<vmem>>, vector<32x16xf32>
    %cst = arith.constant dense<0.000000e+00> : vector<32x128xf32>
    %2 = tpu.matmul %1, %0, %cst {dimension_numbers = #tpu.dot_dimension_numbers<[1], [1], [0], [0], [0, 0, 1, 0], [], []>} : vector<32x16xf32>, vector<128x16xf32>, vector<32x128xf32> -> vector<32x128xf32>
    %c0_3 = arith.constant 0 : index
    %c0_4 = arith.constant 0 : index
    %3 = vector.load %arg3[%c0_3, %c0_4] : memref<32x1xf32, #tpu.memory_space<vmem>>, vector<32x1xf32>
    %4 = vector.broadcast %3 : vector<32x1xf32> to vector<32x128xf32>
    %5 = arith.addf %2, %4 : vector<32x128xf32>
    %6 = math.tanh %5 : vector<32x128xf32>
    %c0_5 = arith.constant 0 : index
    %c0_6 = arith.constant 0 : index
    %7 = vector.load %arg4[%c0_5, %c0_6] : memref<32x32xf32, #tpu.memory_space<vmem>>, vector<32x32xf32>
    %cst_7 = arith.constant dense<0.000000e+00> : vector<32x128xf32>
    %8 = tpu.matmul %7, %6, %cst_7 {dimension_numbers = #tpu.dot_dimension_numbers<[1], [0], [0], [1], [0, 0, 1, 1], [], []>} : vector<32x32xf32>, vector<32x128xf32>, vector<32x128xf32> -> vector<32x128xf32>
    %c0_8 = arith.constant 0 : index
    %c0_9 = arith.constant 0 : index
    %9 = vector.load %arg5[%c0_8, %c0_9] : memref<32x1xf32, #tpu.memory_space<vmem>>, vector<32x1xf32>
    %10 = vector.broadcast %9 : vector<32x1xf32> to vector<32x128xf32>
    %11 = arith.addf %8, %10 : vector<32x128xf32>
    %12 = math.tanh %11 : vector<32x128xf32>
    %c0_10 = arith.constant 0 : index
    %c0_11 = arith.constant 0 : index
    %13 = vector.load %arg6[%c0_10, %c0_11] : memref<1x32xf32, #tpu.memory_space<vmem>>, vector<1x32xf32>
    %cst_12 = arith.constant dense<0.000000e+00> : vector<1x128xf32>
    %14 = tpu.matmul %13, %12, %cst_12 {dimension_numbers = #tpu.dot_dimension_numbers<[1], [0], [0], [1], [0, 0, 1, 1], [], []>} : vector<1x32xf32>, vector<32x128xf32>, vector<1x128xf32> -> vector<1x128xf32>
    %c0_13 = arith.constant 0 : index
    %c0_14 = arith.constant 0 : index
    %15 = memref.load %arg7[%c0_13, %c0_14] : memref<1x1xf32, #tpu.memory_space<smem>>
    %16 = vector.broadcast %15 : f32 to vector<1x128xf32>
    %17 = arith.addf %14, %16 : vector<1x128xf32>
    %18 = vector.shape_cast %17 : vector<1x128xf32> to vector<1x1x128xf32>
    %c0_15 = arith.constant 0 : index
    %c0_16 = arith.constant 0 : index
    %c0_17 = arith.constant 0 : index
    %19 = vector.load %arg8[%c0_15, %c0_16, %c0_17] : memref<1x1x128xf32, #tpu.memory_space<vmem>>, vector<1x1x128xf32>
    tpu.vector_store %arg8[%c0_15, %c0_16, %c0_17], %18 {strides = array<i32>} : memref<1x1x128xf32, #tpu.memory_space<vmem>>, vector<1x1x128xf32>,
    return
  }
  func.func @transform_0(%arg0: i32) -> (i32, i32) {
    %c0_i32 = arith.constant 0 : i32
    %c0_i32_0 = arith.constant 0 : i32
    return %arg0, %c0_i32 : i32, i32
  }
  func.func @transform_1(%arg0: i32) -> (i32, i32) {
    %c0_i32 = arith.constant 0 : i32
    %c0_i32_0 = arith.constant 0 : i32
    %c0_i32_1 = arith.constant 0 : i32
    return %c0_i32, %c0_i32_0 : i32, i32
  }
  func.func @transform_2(%arg0: i32) -> (i32, i32) {
    %c0_i32 = arith.constant 0 : i32
    %c0_i32_0 = arith.constant 0 : i32
    %c0_i32_1 = arith.constant 0 : i32
    return %c0_i32, %c0_i32_0 : i32, i32
  }
  func.func @transform_3(%arg0: i32) -> (i32, i32) {
    %c0_i32 = arith.constant 0 : i32
    %c0_i32_0 = arith.constant 0 : i32
    %c0_i32_1 = arith.constant 0 : i32
    return %c0_i32, %c0_i32_0 : i32, i32
  }
  func.func @transform_4(%arg0: i32) -> (i32, i32) {
    %c0_i32 = arith.constant 0 : i32
    %c0_i32_0 = arith.constant 0 : i32
    %c0_i32_1 = arith.constant 0 : i32
    return %c0_i32, %c0_i32_0 : i32, i32
  }
  func.func @transform_5(%arg0: i32) -> (i32, i32) {
    %c0_i32 = arith.constant 0 : i32
    %c0_i32_0 = arith.constant 0 : i32
    %c0_i32_1 = arith.constant 0 : i32
    return %c0_i32, %c0_i32_0 : i32, i32
  }
  func.func @transform_6(%arg0: i32) -> (i32, i32) {
    %c0_i32 = arith.constant 0 : i32
    %c0_i32_0 = arith.constant 0 : i32
    %c0_i32_1 = arith.constant 0 : i32
    return %c0_i32, %c0_i32_0 : i32, i32
  }
  func.func @transform_7(%arg0: i32) -> (i32, i32, i32) {
    %c0_i32 = arith.constant 0 : i32
    %c0_i32_0 = arith.constant 0 : i32
    %c0_i32_1 = arith.constant 0 : i32
    return %arg0, %c0_i32, %c0_i32_0 : i32, i32, i32
  }
}

</mosaic_0001>

<bundles_post_ra>
// kernel: tpu_custom_call.1
= control target key start
LH: loop header
LB: loop body
LE: loop exit
PB: predicated region body
PF: predicated region fallthrough
CT: control target
= control target key end

     0   :  { %vm72_vm0 = vcmask 130048   ;;  %v673_v6 = vmov 0   ;;  %s879_s0 = inlined_call_operand.vmem [shape: f32[128,16], index: 0, kind: input, shape index: {}]   ;;  %s880_s1 = inlined_call_operand.vmem [shape: f32[32,16], index: 1, kind: input, shape index: {}]   ;;  %s881_s2 = inlined_call_operand.vmem [shape: f32[32,1], index: 2, kind: input, shape index: {}]   ;;  %s882_s3 = inlined_call_operand.vmem [shape: f32[32,32], index: 3, kind: input, shape index: {}]   ;;  %s883_s4 = inlined_call_operand.vmem [shape: f32[32,1], index: 4, kind: input, shape index: {}]   ;;  %s884_s5 = inlined_call_operand.vmem [shape: f32[1,32], index: 5, kind: input, shape index: {}]   ;;  %s885_s6 = inlined_call_operand.<no memory space> [shape: f32[1,1], index: 6, kind: input, shape index: {}]   ;;  %s886_s7 = inlined_call_operand.hbm [shape: f32[1,1,128], index: 7, kind: output, shape index: {}]  }
   0x1   :  { %v28_v0 = vld [vmem:[%s879_s0] sm:$0xff]  ;;  %v29_v1 = vld [vmem:[%s879_s0 + $0x8] sm:$0xff]  ;;  %v30_v2 = vld [vmem:[%s879_s0 + $0x10] sm:$0xff]  ;;  %631 = vset.pattern.permute.xlu0 %v673_v6  ;;  %632 = vset.pattern.permute.xlu1 %v673_v6 }
   0x2   :  { %v564_v3 = vpack.c.bf16 %v29_v1, %v28_v0  ;;  %vm729_vm1 = vmpackc.low %vm72_vm0, %vm72_vm0  ;;  %v31_v5 = vld [vmem:[%s879_s0 + $0x18] sm:$0xff]  ;;  %v44_v8 = vld [vmem:[%s880_s1] sm:$0xff] }
   0x3   :  { %v570_v7 = vpack.c.bf16 %v31_v5, %v30_v2  ;;  %v32_v9 = vld [vmem:[%s879_s0 + $0x20] sm:$0xff]  ;;  %v33_v10 = vld [vmem:[%s879_s0 + $0x28] sm:$0xff]  ;;  %533 = vmatprep.mubr.msk.f32.mxu0 %vm72_vm0, %v44_v8  ;;  %v50_v12 = vld [vmem:[%s881_s2 + $0x10] sm:$0xff] }
   0x4   :  { %566 = vmatprep.subr.msk.bf16.mxu0 %vm729_vm1, %v564_v3  ;;  %v48_v11 = vld [vmem:[%s881_s2] sm:$0xff]  ;;  %64 = vperm.xlu1 %632, %v50_v12   ;;  %v576_v13 = vpack.c.bf16 %v33_v10, %v32_v9  ;;  %v49_v14 = vld [vmem:[%s881_s2 + $0x8] sm:$0xff] }
   0x5   :  { %569 = vmatpush3.bf16.xpose.msk.msra.mxu0 %vm729_vm1, %v564_v3  ;;  %54 = vperm.xlu0 %631, %v48_v11  }
   0x6   :  { %572 = vmatprep.subr.msk.bf16.mxu0 %vm729_vm1, %v570_v7 }
   0x7   :  { %13 = vsyncpa [#allocation4], 0  ;;  %v51_v15 = vld [vmem:[%s881_s2 + $0x18] sm:$0xff]  ;;  %v226_v16 = vld [vmem:[%s883_s4] sm:$0xff]  ;;  %vm250_vm2 = vcmask 261120   ;;  %v674_v60 = vmov 0.0|0.0  }
   0x8   :  { %69 = vperm.xlu1 %632, %v51_v15   ;;  %v34_v17 = vld [vmem:[%s879_s0 + $0x30] sm:$0xff]  ;;  %v35_v18 = vld [vmem:[%s879_s0 + $0x38] sm:$0xff]  ;;  %v227_v19 = vld [vmem:[%s883_s4 + $0x8] sm:$0xff]  ;;  %vm675_vm3 = vmmov 0   ;;  %v676_v61 = vmov 0.0   ;;  %s677_s16 = smov [#allocation3]  }
   0x9   :  { %59 = vperm.xlu0 %631, %v49_v14   ;;  %v582_v20 = vpack.c.bf16 %v35_v18, %v34_v17  ;;  %v228_v21 = vld [vmem:[%s883_s4 + $0x10] sm:$0xff]  ;;  %v229_v22 = vld [vmem:[%s883_s4 + $0x18] sm:$0xff]  ;;  %v36_v23 = vld [vmem:[%s879_s0 + $0x40] sm:$0xff]  ;;  %v354_v17 = vstv %s885_s6  ;;  %s435_s17 = sshll.u32 %s677_s16, 4  ;;  %s436_s17 = int_to_ptr.vmem [resolvable:$true] %s435_s17 }
   0xa   :  { %v37_v24 = vld [vmem:[%s879_s0 + $0x48] sm:$0xff]  ;;  %v38_v26 = vld [vmem:[%s879_s0 + $0x50] sm:$0xff]  ;;  %v39_v27 = vld [vmem:[%s879_s0 + $0x58] sm:$0xff]  ;;  %s649_s18 = scalar_lea.vmem %s436_s17, 16  ;;  %s653_s19 = scalar_lea.vmem %s436_s17, 32 }
   0xb   :  { %v588_v25 = vpack.c.bf16 %v37_v24, %v36_v23  ;;  %v594_v28 = vpack.c.bf16 %v39_v27, %v38_v26  ;;  %v40_v29 = vld [vmem:[%s879_s0 + $0x60] sm:$0xff]  ;;  %v41_v30 = vld [vmem:[%s879_s0 + $0x68] sm:$0xff]  ;;  %v42_v32 = vld [vmem:[%s879_s0 + $0x70] sm:$0xff]  ;;  %p650_p0 = scmp.ne.s32.totalorder %s436_s17, %s649_s18  ;;  %p654_p1 = scmp.lt.s32.totalorder %s436_s17, %s436_s17 }
   0xc   :  { %237 = vperm.xlu1 %632, %v227_v19   ;;  %v600_v31 = vpack.c.bf16 %v41_v30, %v40_v29  ;;  %v43_v33 = vld [vmem:[%s879_s0 + $0x78] sm:$0xff]  ;;  %v45_v35 = vld [vmem:[%s880_s1 + $0x8] sm:$0xff]  ;;  %v46_v36 = vld [vmem:[%s880_s1 + $0x10] sm:$0xff]  ;;  %p655_p2 = scmp.lt.s32.totalorder %s653_s19, %s649_s18 }
   0xd   :  { %575 = vmatpush3.bf16.xpose.msk.msra.mxu0 %vm729_vm1, %v570_v7  ;;  %232 = vperm.xlu0 %631, %v226_v16   ;;  %v606_v34 = vpack.c.bf16 %v43_v33, %v42_v32  ;;  %v47_v37 = vld [vmem:[%s880_s1 + $0x18] sm:$0xff]  ;;  %v222_v38 = vld [vmem:[%s882_s3] sm:$0xff]  ;;  %v223_v57 = vld [vmem:[%s882_s3 + $0x8] sm:$0xff] }
   0xe   :  { %578 = vmatprep.subr.msk.bf16.mxu0 %vm729_vm1, %v576_v13  ;;  %547 = vmatprep.mubr.msk.f32.mxu1 %vm250_vm2, %v222_v38  ;;  %v224_v58 = vld [vmem:[%s882_s3 + $0x10] sm:$0xff]  ;;  %v225_v59 = vld [vmem:[%s882_s3 + $0x18] sm:$0xff]  ;;  %v352_v16 = vld [vmem:[%s884_s5] sm:$0x1]  ;;  %p656_p3 = por %p655_p2, %p654_p1 }
  0x10   :  { %247 = vperm.xlu1 %632, %v229_v22   ;;  %p657_p4 = pnand %p656_p3, %p650_p0 }
  0x11   :  { %242 = vperm.xlu0 %631, %v228_v21  }
  0x15   :  { %581 = vmatpush3.bf16.xpose.msk.msra.mxu0 %vm729_vm1, %v576_v13 }
  0x16   :  { %584 = vmatprep.subr.msk.bf16.mxu0 %vm729_vm1, %v582_v20 }
  0x1d   :  { %587 = vmatpush3.bf16.xpose.msk.msra.mxu0 %vm729_vm1, %v582_v20 }
  0x1e   :  { %590 = vmatprep.subr.msk.bf16.mxu0 %vm729_vm1, %v588_v25 }
  0x25   :  { %593 = vmatpush3.bf16.xpose.msk.msra.mxu0 %vm729_vm1, %v588_v25 }
  0x26   :  { %596 = vmatprep.subr.msk.bf16.mxu0 %vm729_vm1, %v594_v28 }
  0x2d   :  { %599 = vmatpush3.bf16.xpose.msk.msra.mxu0 %vm729_vm1, %v594_v28 }
  0x2e   :  { %602 = vmatprep.subr.msk.bf16.mxu0 %vm729_vm1, %v600_v31 }
  0x35   :  { %605 = vmatpush3.bf16.xpose.msk.msra.mxu0 %vm729_vm1, %v600_v31 }
  0x36   :  { %608 = vmatprep.subr.msk.bf16.mxu0 %vm729_vm1, %v606_v34 }
  0x3d   :  { %611 = vmatpush3.bf16.xpose.msk.msra.mxu0 %vm729_vm1, %v606_v34 }
  0x44   :  { %534 = vmatmul.mubr.msk.f32.vlgmr.msra.gmra.mrb[0].mxu0 %vm72_vm0, %v45_v35 }
  0x45   :  { %536 = vmatprep.mubr.msk.f32.mxu0 %vm72_vm0, %v46_v36 }
  0x48   :  { %537 = vmatmul.mubr.msk.f32.gmra.mrb[2].mxu0 %vm72_vm0, %v47_v37 }
  0x83   :  { %v65_v40 = vpop.permute.xlu1 %64 }
  0x84   :  { %v55_v39 = vpop.permute.xlu0 %54 }
  0x87   :  { %v70_v46 = vpop.permute.xlu1 %69 }
  0x88   :  { %v60_v41 = vpop.permute.xlu0 %59 }
  0x8b   :  { %v238_v62 = vpop.permute.xlu1 %237 }
  0x8c   :  { %v233_v63 = vpop.permute.xlu0 %232 }
  0x8f   :  { %v248_v4 = vpop.permute.xlu1 %247 }
  0x90   :  { %v243_v6 = vpop.permute.xlu0 %242 }
 0x117   :  { %v535_v42 = vpop.f32.mrb[0].mxu0 }
 0x118   :  { %v205_v43 = vadd.f32 %v535_v42, %v60_v41  ;;  %v199_v44 = vpop.f32.mrb[1].mxu0 }
 0x119   :  { %v200_v45 = vadd.f32 %v199_v44, %v55_v39 }
 0x11a   :  { %633 = vtanh.f32 %v205_v43 }
 0x11b   :  { %635 = vtanh.f32 %v200_v45  ;;  %v538_v47 = vpop.f32.mrb[2].mxu0 }
 0x11c   :  { %v215_v48 = vadd.f32 %v538_v47, %v70_v46  ;;  %v209_v49 = vpop.f32.mrb[3].mxu0 }
 0x11d   :  { %v210_v50 = vadd.f32 %v209_v49, %v65_v40 }
 0x11e   :  { %637 = vtanh.f32 %v215_v48 }
 0x11f   :  { %639 = vtanh.f32 %v210_v50 }
 0x124   :  { %v634_v51 = vpop.eup %633 }
 0x125   :  { %v636_v52 = vpop.eup %635 }
 0x126   :  { %v612_v53 = vpack.c.bf16 %v634_v51, %v636_v52 }
 0x128   :  { %v638_v54 = vpop.eup %637  ;;  %613 = vmatprep.subr.bf16.mxu1 %v612_v53 }
 0x129   :  { %v640_v55 = vpop.eup %639  ;;  %615 = vmatpush3.bf16.msra.mxu1 %v612_v53 }
 0x12a   :  { %v616_v56 = vpack.c.bf16 %v638_v54, %v640_v55 }
 0x12c   :  { %617 = vmatprep.subr.bf16.mxu1 %v616_v56 }
 0x12d   :  { %619 = vmatpush3.bf16.msra.mxu1 %v616_v56 }
 0x12e   :  { %620 = vmatprep.subr.bf16.mxu1 %v674_v60 }
 0x130   :  { %548 = vmatmul.mubr.msk.f32.vlgmr.msra.gmra.mrb[0].mxu1 %vm250_vm2, %v223_v57 }
 0x131   :  { %550 = vmatprep.mubr.msk.f32.mxu1 %vm250_vm2, %v224_v58 }
 0x134   :  { %551 = vmatmul.mubr.msk.f32.gmra.mrb[2].mxu1 %vm250_vm2, %v225_v59 }
 0x135   :  { %561 = vmatprep.mubr.msk.f32.mxu1 %vm675_vm3, %v676_v61 }
 0x203   :  { %v549_v0 = vpop.f32.mrb[0].mxu1 }
 0x204   :  { %v335_v1 = vadd.f32 %v549_v0, %v238_v62  ;;  %v329_v2 = vpop.f32.mrb[1].mxu1 }
 0x205   :  { %v330_v3 = vadd.f32 %v329_v2, %v233_v63 }
 0x206   :  { %641 = vtanh.f32 %v335_v1 }
 0x207   :  { %643 = vtanh.f32 %v330_v3  ;;  %v552_v5 = vpop.f32.mrb[2].mxu1 }
 0x208   :  { %v345_v7 = vadd.f32 %v552_v5, %v248_v4  ;;  %v339_v8 = vpop.f32.mrb[3].mxu1 }
 0x209   :  { %v340_v9 = vadd.f32 %v339_v8, %v243_v6 }
 0x20a   :  { %645 = vtanh.f32 %v345_v7 }
 0x20b   :  { %647 = vtanh.f32 %v340_v9 }
 0x210   :  { %v642_v10 = vpop.eup %641 }
 0x211   :  { %v644_v11 = vpop.eup %643 }
 0x212   :  { %v621_v12 = vpack.c.bf16 %v642_v10, %v644_v11 }
 0x214   :  { %v646_v13 = vpop.eup %645  ;;  %622 = vmatpush3.bf16.msra.mxu1 %v621_v12 }
 0x215   :  { %v648_v14 = vpop.eup %647  ;;  %623 = vmatprep.subr.bf16.mxu1 %v674_v60 }
 0x216   :  { %v624_v15 = vpack.c.bf16 %v646_v13, %v648_v14 }
 0x218   :  { %625 = vmatpush3.bf16.msra.mxu1 %v624_v15 }
 0x21b   :  { %562 = vmatmul.mubr.msk.f32.vlgmr.msra.gmra.mrb[4].mxu1 %vm250_vm2, %v352_v16 }
 0x2ee   :  { %v424_v18 = vpop.f32.mrb[4].mxu1 }
 0x2ef   :  { %v425_v19 = vadd.f32 %v424_v18, %v354_v17  ;;  %v563_v20 = vpop.f32.mrb[5].mxu1 }
 0x2f1   :  { %428 = vst [vmem:[#allocation3] sm:$0x1] %v425_v19 }
 0x2f2   :  { %660 = shalt.err (!%p657_p4)
}
 0x2f3   :  { %s661_s21 = scalar_lea.hbm %s886_s7, 16 }
 0x2f4   :  { %p662_p5 = scmp.ne.s32.totalorder %s886_s7, %s661_s21  ;;  %p665_p6 = scmp.lt.u32.totalorder %s661_s21, %s886_s7 }
 0x2f6   :  { %p667_p7 = pnand %p665_p6, %p662_p5 }
 0x2f8   :  { %670 = shalt.err (!%p667_p7)
}
 0x2f9   :  { %438 = dma.vmem_to_hbm [thread:$0]  %s436_s17, 16, %s886_s7, [#allocation4]  }
 0x2fa   :  { %671 = dma.done.wait [#allocation4], 16  }
 0x2fb   :  { %672 = vsyncadd [#allocation4], 4294967280 }
 0x2fc   :  { %442 = vsyncpa [#allocation4], 1 }

</bundles_post_ra>
